<compile_context>
chip_gen: v6e
topology: v6e:2x2x1
jax: 0.10.0
libtpu: 0.0.40
codegen_flags: <defaults>
</compile_context>

<pallas_src>
import jax
import jax.numpy as jnp
from jax.experimental import pallas as pl
from jax.experimental.pallas import tpu as pltpu

BN_EPS = 1e-5


def _residual_block_kernel(x_ref, w_ref, bn_ref, alpha_ref, out_ref):
    """Single-invocation kernel, channel-on-sublane / spatial-on-lane layout.

    x_ref     : (9*Cin, NHW) bf16   shifted-window taps, tap-major on sublanes
    w_ref     : (2*Cout, 9*Cin) bf16 fused weights; rows [0:Cout] = 3x3 conv,
                                     rows [Cout:2*Cout] = 1x1 x_linear conv
                                     (nonzero only on centre-tap columns)
    bn_ref    : (2*Cout, 2) f32      packed [gamma | beta] for both branches
    alpha_ref : (1,)  SMEM           residual mixing scalar
    out_ref   : (Cout, NHW) f32      lane-dense output
    """
    cout = out_ref.shape[0]

    # One fused MXU contraction on bf16 operands, f32 accumulation:
    # (2*Cout, 36) @ (36, NHW) -> (2*Cout, NHW)
    res = jnp.dot(w_ref[...], x_ref[...], preferred_element_type=jnp.float32)

    # Fused training-mode BatchNorm over both branches at once.
    # (Conv biases were dropped: mean subtraction cancels them exactly.)
    mean = jnp.mean(res, axis=1, keepdims=True)           # cross-lane reduce (XLU)
    cen = res - mean
    var = jnp.mean(cen * cen, axis=1, keepdims=True)      # two-pass: var >= 0
    y = cen * jax.lax.rsqrt(var + BN_EPS)                 # rsqrt on EUP slot
    y = y * bn_ref[:, 0:1] + bn_ref[:, 1:2]               # gamma / beta

    # Row Cout (=8) is a sublane-tile boundary -> free slice.
    h = jnp.maximum(y[:cout, :], 0.0)                     # ReLU, main branch only
    lin = y[cout:, :]                                     # x_linear branch

    # out = alpha * main + x_linear   (dense (Cout, NHW) store)
    out_ref[...] = alpha_ref[0] * h + lin


def prepare_params(params):
    """One-time parameter preprocessing (hoisted out of the per-call path)."""
    KH, KW, Cin, Cout = params["w3"].shape

    # Fused weight (2*Cout, 9*Cin):
    #   rows 0:Cout       -> 3x3 conv:  W[o, t*Cin+c] = w3[kh, kw, c, o]
    #   rows Cout:2*Cout  -> 1x1 x_linear conv on the centre tap only
    w_main = jnp.transpose(params["w3"].reshape(KH * KW, Cin, Cout),
                           (2, 0, 1)).reshape(Cout, KH * KW * Cin)
    center = (KH // 2) * KW + (KW // 2)
    w_lin = jnp.zeros((Cout, KH * KW * Cin), jnp.float32)
    w_lin = w_lin.at[:, center * Cin:(center + 1) * Cin].set(params["wx"].T)
    w_big = jnp.concatenate([w_main, w_lin], axis=0).astype(jnp.bfloat16)

    # Conv biases b3 / bx intentionally dropped (cancelled by BN mean subtraction).
    bn = jnp.stack(
        [jnp.concatenate([params["g3"], params["gx"]]),    # gamma (both branches)
         jnp.concatenate([params["be3"], params["bex"]])], # beta  (both branches)
        axis=1).astype(jnp.float32)                        # (2*Cout, 2)

    alpha = params["alpha"].reshape(1).astype(jnp.float32)
    return {"w_big": w_big, "bn": bn, "alpha": alpha}


@jax.jit
def residual_block_forward(x_nchw, w_big, bn, alpha):
    """Jitted wrapper: layout glue (channel-major transpose, replicate pad,
    tap stack) fused with a single pallas_call."""
    N, Cin, H, W = x_nchw.shape
    Cout = w_big.shape[0] // 2
    KHW = w_big.shape[1] // Cin
    KH = KW = int(round(KHW ** 0.5))
    NHW = N * H * W

    # Channel-major so the spatial axis ends up lane-dense inside the kernel.
    x_c = jnp.transpose(x_nchw, (1, 0, 2, 3)).astype(jnp.float32)   # (Cin, N, H, W)
    # padding_mode='replicate' == jnp.pad mode='edge' (spatial dims only)
    ph, pw = KH // 2, KW // 2
    xp = jnp.pad(x_c, ((0, 0), (0, 0), (ph, ph), (pw, pw)), mode="edge")

    # 9 shifted windows, tap-major, flattened to (9*Cin, N*H*W). Layout glue
    # only; all arithmetic happens inside the kernel. Cast to bf16 for the MXU.
    taps = jnp.stack([xp[:, :, kh:kh + H, kw:kw + W]
                      for kh in range(KH) for kw in range(KW)], axis=0)
    x_taps = taps.reshape(KH * KW * Cin, NHW).astype(jnp.bfloat16)

    # TODO(synk): for large NHW, tile the spatial axis with a grid (sized for
    # v7x 64 MiB VMEM) + two-pass BN instead of materializing full im2col.
    vmem = pl.BlockSpec(memory_space=pltpu.MemorySpace.VMEM)
    smem = pl.BlockSpec(memory_space=pltpu.MemorySpace.SMEM)

    out_cp = pl.pallas_call(
        _residual_block_kernel,
        out_shape=jax.ShapeDtypeStruct((Cout, NHW), jnp.float32),
        in_specs=[vmem, vmem, vmem, smem],
        out_specs=vmem,
    )(x_taps, w_big, bn, alpha)

    out = out_cp.reshape(Cout, N, H, W)
    return jnp.transpose(out, (1, 0, 2, 3))                 # back to NCHW


def _reference_forward(x_nchw, params):
    """Pure-JAX reference (independent of the kernel) for a correctness check."""
    x = jnp.transpose(x_nchw, (0, 2, 3, 1)).astype(jnp.float32)
    xp = jnp.pad(x, ((0, 0), (1, 1), (1, 1), (0, 0)), mode="edge")
    conv = jax.lax.conv_general_dilated(
        xp, params["w3"], window_strides=(1, 1), padding="VALID",
        dimension_numbers=("NHWC", "HWIO", "NHWC")) + params["b3"]
    m = conv.mean(axis=(0, 1, 2), keepdims=True)
    v = ((conv - m) ** 2).mean(axis=(0, 1, 2), keepdims=True)
    h = (conv - m) / jnp.sqrt(v + BN_EPS) * params["g3"] + params["be3"]
    h = jnp.maximum(h, 0.0)
    lin = jnp.einsum("nhwc,cf->nhwf", x, params["wx"]) + params["bx"]
    ml = lin.mean(axis=(0, 1, 2), keepdims=True)
    vl = ((lin - ml) ** 2).mean(axis=(0, 1, 2), keepdims=True)
    lin = (lin - ml) / jnp.sqrt(vl + BN_EPS) * params["gx"] + params["bex"]
    out = params["alpha"] * h + lin
    return jnp.transpose(out, (0, 3, 1, 2))


if __name__ == "__main__":
    N, Cin, Cout, H, W = 2, 4, 8, 16, 16
    key = jax.random.PRNGKey(0)
    ks = jax.random.split(key, 9)
    params = {
        # Conv2d(4, 8, k=3) weights (HWIO) + bias
        "w3": 0.2 * jax.random.normal(ks[0], (3, 3, Cin, Cout), jnp.float32),
        "b3": 0.1 * jax.random.normal(ks[1], (Cout,), jnp.float32),
        # BatchNorm2d(8) affine params (main branch)
        "g3": 1.0 + 0.1 * jax.random.normal(ks[2], (Cout,), jnp.float32),
        "be3": 0.1 * jax.random.normal(ks[3], (Cout,), jnp.float32),
        # x_linear: Conv2d(4, 8, k=1) weights + bias, BatchNorm2d(8) affine params
        "wx": 0.2 * jax.random.normal(ks[4], (Cin, Cout), jnp.float32),
        "bx": 0.1 * jax.random.normal(ks[5], (Cout,), jnp.float32),
        "gx": 1.0 + 0.1 * jax.random.normal(ks[6], (Cout,), jnp.float32),
        "bex": 0.1 * jax.random.normal(ks[7], (Cout,), jnp.float32),
        # torch __init__ sets alpha=0.0; use a nonzero deterministic value so the
        # conv branch actually contributes in this synthetic test.
        "alpha": jnp.array(0.5, jnp.float32),
    }
    x = jax.random.normal(ks[8], (N, Cin, H, W), jnp.float32)

    # One-time weight fusion / BN-param packing (not part of the hot path).
    prepped = jax.tree_util.tree_map(jax.block_until_ready, prepare_params(params))

    out = jax.block_until_ready(
        residual_block_forward(x, prepped["w_big"], prepped["bn"], prepped["alpha"]))
    ref = jax.block_until_ready(_reference_forward(x, params))

    assert out.shape == (N, Cout, H, W), out.shape
    # bf16 matmul operands -> slightly looser tolerance than the pure-f32 version.
    assert jnp.allclose(out, ref, atol=2e-2, rtol=2e-2), \
        float(jnp.max(jnp.abs(out - ref)))
    print("KERNEL_OK")
</pallas_src>

<mosaic_0001>
module attributes {stable_mosaic.version = 11 : i64} {
  func.func @_residual_block_kernel(%arg0: memref<36x512xbf16, #tpu.memory_space<vmem>>, %arg1: memref<16x36xbf16, #tpu.memory_space<vmem>>, %arg2: memref<16x2xf32, #tpu.memory_space<vmem>>, %arg3: memref<1xf32, #tpu.memory_space<smem>>, %arg4: memref<8x512xf32, #tpu.memory_space<vmem>>) attributes {dimension_semantics = [], scalar_prefetch = 0 : i64, scratch_operands = 0 : i64, tpu.core_type = #tpu.core_type<tc>} {
    %c0 = arith.constant 0 : index
    %c0_0 = arith.constant 0 : index
    %0 = vector.load %arg1[%c0, %c0_0] : memref<16x36xbf16, #tpu.memory_space<vmem>>, vector<16x36xbf16>
    %c0_1 = arith.constant 0 : index
    %c0_2 = arith.constant 0 : index
    %1 = vector.load %arg0[%c0_1, %c0_2] : memref<36x512xbf16, #tpu.memory_space<vmem>>, vector<36x512xbf16>
    %cst = arith.constant dense<0.000000e+00> : vector<16x512xf32>
    %2 = tpu.matmul %0, %1, %cst {dimension_numbers = #tpu.dot_dimension_numbers<[1], [0], [0], [1], [0, 0, 1, 1], [], []>} : vector<16x36xbf16>, vector<36x512xbf16>, vector<16x512xf32> -> vector<16x512xf32>
    %cst_3 = arith.constant dense<0.000000e+00> : vector<16xf32>
    %3 = vector.multi_reduction <add>, %2, %cst_3 [1] : vector<16x512xf32> to vector<16xf32>
    %4 = vector.shape_cast %3 : vector<16xf32> to vector<16x1xf32>
    %cst_4 = arith.constant 5.120000e+02 : f32
    %5 = vector.broadcast %cst_4 : f32 to vector<16x1xf32>
    %6 = arith.divf %4, %5 : vector<16x1xf32>
    %7 = vector.broadcast %6 : vector<16x1xf32> to vector<16x512xf32>
    %8 = arith.subf %2, %7 : vector<16x512xf32>
    %9 = arith.mulf %8, %8 : vector<16x512xf32>
    %cst_5 = arith.constant dense<0.000000e+00> : vector<16xf32>
    %10 = vector.multi_reduction <add>, %9, %cst_5 [1] : vector<16x512xf32> to vector<16xf32>
    %11 = vector.shape_cast %10 : vector<16xf32> to vector<16x1xf32>
    %cst_6 = arith.constant 5.120000e+02 : f32
    %12 = vector.broadcast %cst_6 : f32 to vector<16x1xf32>
    %13 = arith.divf %11, %12 : vector<16x1xf32>
    %cst_7 = arith.constant 9.99999974E-6 : f32
    %14 = vector.broadcast %cst_7 : f32 to vector<16x1xf32>
    %15 = arith.addf %13, %14 : vector<16x1xf32>
    %16 = math.rsqrt %15 : vector<16x1xf32>
    %17 = vector.broadcast %16 : vector<16x1xf32> to vector<16x512xf32>
    %18 = arith.mulf %8, %17 : vector<16x512xf32>
    %c0_8 = arith.constant 0 : index
    %c0_9 = arith.constant 0 : index
    %19 = vector.load %arg2[%c0_8, %c0_9] : memref<16x2xf32, #tpu.memory_space<vmem>>, vector<16x1xf32>
    %20 = vector.broadcast %19 : vector<16x1xf32> to vector<16x512xf32>
    %21 = arith.mulf %18, %20 : vector<16x512xf32>
    %c0_10 = arith.constant 0 : index
    %c1 = arith.constant 1 : index
    %22 = vector.load %arg2[%c0_10, %c1] : memref<16x2xf32, #tpu.memory_space<vmem>>, vector<16x1xf32>
    %23 = vector.broadcast %22 : vector<16x1xf32> to vector<16x512xf32>
    %24 = arith.addf %21, %23 : vector<16x512xf32>
    %25 = vector.extract_strided_slice %24 {offsets = [0, 0], sizes = [8, 512], strides = [1, 1]} : vector<16x512xf32> to vector<8x512xf32>
    %cst_11 = arith.constant 0.000000e+00 : f32
    %26 = vector.broadcast %cst_11 : f32 to vector<8x512xf32>
    %27 = arith.maximumf %25, %26 : vector<8x512xf32>
    %28 = vector.extract_strided_slice %24 {offsets = [8, 0], sizes = [8, 512], strides = [1, 1]} : vector<16x512xf32> to vector<8x512xf32>
    %c0_12 = arith.constant 0 : index
    %29 = memref.load %arg3[%c0_12] : memref<1xf32, #tpu.memory_space<smem>>
    %30 = vector.broadcast %29 : f32 to vector<8x512xf32>
    %31 = arith.mulf %30, %27 : vector<8x512xf32>
    %32 = arith.addf %31, %28 : vector<8x512xf32>
    %c0_13 = arith.constant 0 : index
    %c0_14 = arith.constant 0 : index
    %33 = vector.load %arg4[%c0_13, %c0_14] : memref<8x512xf32, #tpu.memory_space<vmem>>, vector<8x512xf32>
    tpu.vector_store %arg4[%c0_13, %c0_14], %32 {strides = array<i32>} : memref<8x512xf32, #tpu.memory_space<vmem>>, vector<8x512xf32>,
    return
  }
}

</mosaic_0001>

<bundles_post_ra>
// kernel: residual_block_forward.1
= control target key start
LH: loop header
LB: loop body
LE: loop exit
PB: predicated region body
PF: predicated region fallthrough
CT: control target
= control target key end

     0   :  { %vm90_vm0 = vcmask 1041408   ;;  %v345_v2 = vmov 0   ;;  %vm86_vm1 = vcmask 293888   ;;  %v346_v18 = vmov 1   ;;  %s426_s0 = inlined_call_operand.vmem [shape: bf16[36,512], index: 0, kind: input, shape index: {}]   ;;  %s427_s1 = inlined_call_operand.vmem [shape: bf16[16,36], index: 1, kind: input, shape index: {}]   ;;  %s428_s2 = inlined_call_operand.vmem [shape: f32[16,2], index: 2, kind: input, shape index: {}]   ;;  %s429_s3 = inlined_call_operand.<no memory space> [shape: f32[1], index: 3, kind: input, shape index: {}]   ;;  %s430_s4 = inlined_call_operand.vmem [shape: f32[8,512], index: 4, kind: output, shape index: {}]  }
   0x1   :  { %v29_v0 = vld [vmem:[%s426_s0 + $0x40] sm:$0x33]  ;;  %v30_v1 = vld [vmem:[%s426_s0 + $0x48] sm:$0x33]  ;;  %135 = vmatprep.mubr.bf16.mxu0 %v345_v2  ;;  %178 = vmatprep.mubr.bf16.mxu1 %v345_v2 }
   0x2   :  { %v310_v3 = vcombine.high %v29_v0, %v29_v0  ;;  %v312_v4 = vcombine.high %v30_v1, %v30_v1  ;;  %v309_v5 = vcombine.low %v29_v0, %v29_v0  ;;  %v311_v6 = vcombine.low %v30_v1, %v30_v1  ;;  %v328_v7 = vld [vmem:[%s426_s0 + $0x24] ss:$16 sps:$4 sm:$0xff]   ;;  %319 = vset.pattern.permute.xlu0 %v345_v2  ;;  %v330_v8 = vld [vmem:[%s426_s0 + $0x2c] ss:$16 sps:$4 sm:$0xff]   ;;  %v332_v11 = vld [vmem:[%s426_s0 + $0x20] ss:$16 sps:$4 sm:$0xff]  }
   0x3   :  { %v333_v12 = vld [vmem:[%s426_s0 + $0x28] ss:$16 sps:$4 sm:$0xff]   ;;  %v334_v13 = vld [vmem:[%s426_s0 + $0x4] ss:$16 sps:$4 sm:$0xff]   ;;  %v336_v14 = vld [vmem:[%s426_s0 + $0xc] ss:$16 sps:$4 sm:$0xff]   ;;  %320 = vset.pattern.permute.xlu1 %v346_v18 }
   0x4   :  { %313 = vmatprep.subr.msk.bf16.mxu0 %vm90_vm0, %v310_v3  ;;  %315 = vmatprep.subr.msk.bf16.mxu1 %vm90_vm0, %v312_v4  ;;  %v92_v9 = vsel %vm90_vm0, %v309_v5, 0  ;;  %v98_v10 = vsel %vm90_vm0, %v311_v6, 0  ;;  %v338_v15 = vld [vmem:[%s426_s0] ss:$16 sps:$4 sm:$0xff]   ;;  %v339_v16 = vld [vmem:[%s426_s0 + $0x8] ss:$16 sps:$4 sm:$0xff]  }
   0x5   :  { %114 = vmatpush1.bf16.msra.mxu0 %v92_v9  ;;  %157 = vmatpush1.bf16.msra.mxu1 %v98_v10  ;;  %v340_v17 = vld [vmem:[%s427_s1] sm:$0xff]   ;;  %v243_v20 = vld [vmem:[%s428_s2 + $0x8] sm:$0xff] }
   0x6   :  { %115 = vmatprep.subr.bf16.mxu0 %v328_v7  ;;  %158 = vmatprep.subr.bf16.mxu1 %v330_v8  ;;  %v242_v19 = vld [vmem:[%s428_s2] sm:$0xff] }
   0x7   :  { %263 = vperm.xlu1 %320, %v242_v19  }
   0x9   :  { %116 = vmatpush1.bf16.msra.mxu0 %v332_v11  ;;  %159 = vmatpush1.bf16.msra.mxu1 %v333_v12 }
   0xa   :  { %117 = vmatprep.subr.bf16.mxu0 %v334_v13  ;;  %160 = vmatprep.subr.bf16.mxu1 %v336_v14 }
   0xb   :  { %321 = vset.pattern.permute.xlu1 %v345_v2 }
   0xc   :  { %251 = vperm.xlu1 %321, %v243_v20  }
   0xd   :  { %118 = vmatpush1.bf16.msra.mxu0 %v338_v15  ;;  %161 = vmatpush1.bf16.msra.mxu1 %v339_v16  ;;  %v283_v16 = vstv %s429_s3 }
  0x10   :  { %314 = vmatmul.mubr.msk.bf16.vlgmr.msra.gmra.mxu0 %vm86_vm1, %v340_v17  ;;  %316 = vmatmul.mubr.msk.bf16.vlgmr.msra.gmra.mxu1 %vm86_vm1, %v340_v17 }
  0x11   :  { %322 = vset.pattern.permute.xlu1 %v346_v18 }
  0x82   :  { %v264_v61 = vpop.permute.xlu1 %263 }
  0x87   :  { %v252_v62 = vpop.permute.xlu1 %251 }
  0xd0   :  { %v137_v21 = vpop.f32.mrf.mxu0  ;;  %v180_v22 = vpop.f32.mrf.mxu1 }
  0xd2   :  { %v139_v23 = vpop.f32.mrf.mxu0  ;;  %v182_v24 = vpop.f32.mrf.mxu1 }
  0xd3   :  { %v189_v25 = vadd.f32 %v139_v23, %v137_v21 }
  0xd4   :  { %v141_v26 = vpop.f32.mrf.mxu0  ;;  %v184_v28 = vpop.f32.mrf.mxu1 }
  0xd5   :  { %v190_v27 = vadd.f32 %v189_v25, %v180_v22 }
  0xd6   :  { %v143_v29 = vpop.f32.mrf.mxu0  ;;  %v186_v33 = vpop.f32.mrf.mxu1 }
  0xd7   :  { %v194_v30 = vadd.f32 %v143_v29, %v141_v26  ;;  %v191_v31 = vadd.f32 %v190_v27, %v182_v24 }
  0xd9   :  { %v195_v32 = vadd.f32 %v194_v30, %v184_v28  ;;  %192 = vadd.xlane.f32.xlu0 %v191_v31 }
  0xdb   :  { %v196_v34 = vadd.f32 %v195_v32, %v186_v33 }
  0xdd   :  { %197 = vadd.xlane.f32.xlu0 %v196_v34 }
  0xf3   :  { %246 = vperm.xlu0 %319, %v242_v19  }
  0xf7   :  { %323 = vset.pattern.permute.xlu0 %v346_v18 }
 0x162   :  { %v193_v35 = vpop.xlane.xlu0 %192 }
 0x163   :  { %v200_v36 = vmul.f32 0.001953125, %v193_v35 }
 0x165   :  { %v202_v37 = vsub.f32 %v137_v21, %v200_v36  ;;  %v203_v38 = vsub.f32 %v139_v23, %v200_v36  ;;  %v204_v39 = vsub.f32 %v180_v22, %v200_v36  ;;  %v205_v41 = vsub.f32 %v182_v24, %v200_v36 }
 0x166   :  { %v198_v40 = vpop.xlane.xlu0 %197 }
 0x167   :  { %v201_v42 = vmul.f32 0.001953125, %v198_v40  ;;  %v210_v43 = vmul.f32 %v202_v37, %v202_v37  ;;  %v211_v44 = vmul.f32 %v203_v38, %v203_v38  ;;  %v212_v45 = vmul.f32 %v204_v39, %v204_v39 }
 0x168   :  { %v213_v50 = vmul.f32 %v205_v41, %v205_v41 }
 0x169   :  { %v206_v46 = vsub.f32 %v141_v26, %v201_v42  ;;  %v207_v47 = vsub.f32 %v143_v29, %v201_v42  ;;  %v218_v48 = vadd.f32 %v211_v44, %v210_v43  ;;  %v208_v49 = vsub.f32 %v184_v28, %v201_v42 }
 0x16a   :  { %v209_v52 = vsub.f32 %v186_v33, %v201_v42 }
 0x16b   :  { %v219_v51 = vadd.f32 %v218_v48, %v212_v45  ;;  %v214_v53 = vmul.f32 %v206_v46, %v206_v46  ;;  %v215_v54 = vmul.f32 %v207_v47, %v207_v47  ;;  %v216_v56 = vmul.f32 %v208_v49, %v208_v49 }
 0x16c   :  { %v217_v58 = vmul.f32 %v209_v52, %v209_v52 }
 0x16d   :  { %v220_v55 = vadd.f32 %v219_v51, %v213_v50  ;;  %v223_v57 = vadd.f32 %v215_v54, %v214_v53 }
 0x16e   :  { %v247_v6 = vpop.permute.xlu0 %246 }
 0x16f   :  { %221 = vadd.xlane.f32.xlu1 %v220_v55  ;;  %v224_v59 = vadd.f32 %v223_v57, %v216_v56 }
 0x171   :  { %v225_v60 = vadd.f32 %v224_v59, %v217_v58 }
 0x173   :  { %226 = vadd.xlane.f32.xlu1 %v225_v60 }
 0x184   :  { %267 = vperm.xlu1 %322, %v243_v20  }
 0x1f8   :  { %v222_v63 = vpop.xlane.xlu1 %221 }
 0x1f9   :  { %v228_v0 = vmul.f32 0.001953125, %v222_v63 }
 0x1fb   :  { %v230_v1 = vadd.f32 1e-05, %v228_v0 }
 0x1fc   :  { %v227_v2 = vpop.xlane.xlu1 %226 }
 0x1fd   :  { %341 = vrsqrt.f32 %v230_v1  ;;  %v229_v3 = vmul.f32 0.001953125, %v227_v2 }
 0x1ff   :  { %v231_v4 = vadd.f32 1e-05, %v229_v3 }
 0x200   :  { %v268_v29 = vpop.permute.xlu1 %267 }
 0x201   :  { %343 = vrsqrt.f32 %v231_v4 }
 0x20a   :  { %v342_v5 = vpop.eup %341 }
 0x20b   :  { %v234_v7 = vmul.f32 %v342_v5, %v202_v37  ;;  %v235_v8 = vmul.f32 %v342_v5, %v203_v38  ;;  %v236_v9 = vmul.f32 %v342_v5, %v204_v39  ;;  %v237_v10 = vmul.f32 %v342_v5, %v205_v41 }
 0x20d   :  { %v254_v11 = vmul.f32 %v247_v6, %v234_v7  ;;  %v255_v12 = vmul.f32 %v247_v6, %v235_v8  ;;  %v256_v13 = vmul.f32 %v247_v6, %v236_v9  ;;  %v257_v14 = vmul.f32 %v247_v6, %v237_v10 }
 0x20e   :  { %v344_v15 = vpop.eup %343 }
 0x20f   :  { %v270_v17 = vadd.f32 %v264_v61, %v254_v11  ;;  %v271_v18 = vadd.f32 %v264_v61, %v255_v12  ;;  %v272_v19 = vadd.f32 %v264_v61, %v256_v13  ;;  %v273_v20 = vadd.f32 %v264_v61, %v257_v14 }
 0x210   :  { %v238_v21 = vmul.f32 %v344_v15, %v206_v46  ;;  %v239_v22 = vmul.f32 %v344_v15, %v207_v47  ;;  %v240_v23 = vmul.f32 %v344_v15, %v208_v49  ;;  %v241_v24 = vmul.f32 %v344_v15, %v209_v52 }
 0x211   :  { %v278_v25 = vmax.f32 %v270_v17, 0.0  ;;  %v279_v26 = vmax.f32 %v271_v18, 0.0  ;;  %v280_v27 = vmax.f32 %v272_v19, 0.0  ;;  %v281_v28 = vmax.f32 %v273_v20, 0.0 }
 0x212   :  { %v258_v30 = vmul.f32 %v252_v62, %v238_v21  ;;  %v259_v31 = vmul.f32 %v252_v62, %v239_v22  ;;  %v260_v32 = vmul.f32 %v252_v62, %v240_v23  ;;  %v261_v33 = vmul.f32 %v252_v62, %v241_v24 }
 0x213   :  { %v284_v34 = vmul.f32 %v283_v16, %v278_v25  ;;  %v285_v35 = vmul.f32 %v283_v16, %v279_v26  ;;  %v286_v36 = vmul.f32 %v283_v16, %v280_v27  ;;  %v287_v37 = vmul.f32 %v283_v16, %v281_v28 }
 0x214   :  { %v274_v38 = vadd.f32 %v268_v29, %v258_v30  ;;  %v275_v39 = vadd.f32 %v268_v29, %v259_v31  ;;  %v276_v40 = vadd.f32 %v268_v29, %v260_v32  ;;  %v277_v41 = vadd.f32 %v268_v29, %v261_v33 }
 0x216   :  { %v288_v42 = vadd.f32 %v284_v34, %v274_v38  ;;  %v289_v43 = vadd.f32 %v285_v35, %v275_v39  ;;  %v290_v44 = vadd.f32 %v286_v36, %v276_v40  ;;  %v291_v45 = vadd.f32 %v287_v37, %v277_v41 }
 0x218   :  { %292 = vst [vmem:[%s430_s4] sm:$0xff] %v288_v42  ;;  %293 = vst [vmem:[%s430_s4 + $0x8] sm:$0xff] %v289_v43 }
 0x219   :  { %294 = vst [vmem:[%s430_s4 + $0x10] sm:$0xff] %v290_v44  ;;  %295 = vst [vmem:[%s430_s4 + $0x18] sm:$0xff] %v291_v45 }

</bundles_post_ra>
